<compile_context>
chip_gen: v5e
topology: v5e:2x2
jax: 0.10.0
libtpu: 0.0.40
codegen_flags: <defaults>
</compile_context>

<pallas_src>
import jax
import jax.numpy as jnp
from jax.experimental import pallas as pl
from jax.experimental.pallas import tpu as pltpu

HIDDEN = 100  # fixed by the module: nn.Linear(latent_dim, 100)


def _round_up(n, m):
    return (n + m - 1) // m * m


def decoder_kernel(x_ref, w1_ref, b1_ref, w2_ref, b2_ref, o_ref):
    # In-kernel bf16 cast of the activation tile (VPU has slack; saves an XLA copy).
    x = x_ref[...].astype(jnp.bfloat16)
    # h = relu(x @ W1 + b1): bf16 MXU inputs, f32 accumulation, f32 epilogue
    # (f32 epilogue is correct on v5e, whose VPU has no bf16).
    h = jnp.dot(x, w1_ref[...], preferred_element_type=jnp.float32)
    h = jnp.maximum(h + b1_ref[...], 0.0)            # (TB, Hp) + (1, Hp) broadcast
    # out = h @ W2 + b2
    out = jnp.dot(h.astype(jnp.bfloat16), w2_ref[...],
                  preferred_element_type=jnp.float32)
    o_ref[...] = (out + b2_ref[...]).astype(o_ref.dtype)


def prepare_decoder_params(w1, b1, w2, b2):
    """One-time layout prep (static across calls): pad hidden dim 100->128 and
    cast weights to bf16. Keeps per-call HLO to just the pallas_call."""
    L, H = w1.shape
    D = w2.shape[1]
    Hp = _round_up(H, 128)  # lane-dense hidden (VMEM-only; numerically exact)
    w1p = jnp.zeros((L, Hp), jnp.bfloat16).at[:, :H].set(w1.astype(jnp.bfloat16))
    b1p = jnp.zeros((1, Hp), jnp.float32).at[:, :H].set(b1.reshape(1, H).astype(jnp.float32))
    w2p = jnp.zeros((Hp, D), jnp.bfloat16).at[:H, :].set(w2.astype(jnp.bfloat16))
    b2p = b2.reshape(1, D).astype(jnp.float32)
    return w1p, b1p, w2p, b2p


def decoder_forward(x, w1p, b1p, w2p, b2p, *, max_batch_tile=2048):
    """decoder forward: relu(x @ W1 + b1) @ W2 + b2.

    x: (B, L) f32; prepared params from prepare_decoder_params.
    Returns (B, D) f32 (no padded rows/cols are ever written to HBM).
    """
    B, L = x.shape
    assert w1p.shape[0] == L
    Hp = w1p.shape[1]
    D = w2p.shape[1]
    assert b1p.shape == (1, Hp) and w2p.shape == (Hp, D) and b2p.shape == (1, D)

    # ---- batch tiling ------------------------------------------------------
    # Balanced tiles; aim for >=2 grid steps so v7x's two TensorCores both work.
    n_tiles = max(pl.cdiv(B, max_batch_tile), 2)
    TB = min(_round_up(pl.cdiv(B, n_tiles), 8), _round_up(B, 8))
    grid = (pl.cdiv(B, TB),)

    # ---- scoped-VMEM limit only if large tiles could exceed the default -----
    est_vmem = (2 * TB * (L + D) * 4          # double-buffered x tile + out tile (f32)
                + TB * Hp * 4                 # f32 hidden intermediate
                + (L * Hp + Hp * D) * 2       # bf16 weights (VMEM-resident)
                + (Hp + D) * 4)               # biases
    vmem_limit = None
    if est_vmem > (12 << 20):                 # default scoped limit is 16 MiB on v5e
        vmem_limit = int(min(max(2 * est_vmem, 16 << 20), 100 << 20))

    return pl.pallas_call(
        decoder_kernel,
        out_shape=jax.ShapeDtypeStruct((B, D), jnp.float32),
        grid_spec=pl.GridSpec(
            grid=grid,
            in_specs=[
                pl.BlockSpec((TB, L), lambda i: (i, 0)),    # x: tiled over batch
                pl.BlockSpec((L, Hp), lambda i: (0, 0)),    # W1: VMEM-resident
                pl.BlockSpec((1, Hp), lambda i: (0, 0)),    # b1
                pl.BlockSpec((Hp, D), lambda i: (0, 0)),    # W2
                pl.BlockSpec((1, D), lambda i: (0, 0)),     # b2
            ],
            # Full-D output block; last (partial) batch tile is masked on store,
            # so exactly B*D*4 bytes are written — no wrapper slice needed.
            out_specs=pl.BlockSpec((TB, D), lambda i: (i, 0)),
        ),
        compiler_params=pltpu.CompilerParams(
            dimension_semantics=("parallel",),   # batch tiles shard across TCs (v7x)
            vmem_limit_bytes=vmem_limit,
        ),
    )(x, w1p, b1p, w2p, b2p)


def init_decoder_params(key, input_dim, latent_dim, hidden_dim=HIDDEN):
    """nn.Linear-style init; weights stored as (in, out) so the kernel does x @ W."""
    k1, k2, k3, k4 = jax.random.split(key, 4)
    lim1 = 1.0 / jnp.sqrt(latent_dim)
    w1 = jax.random.uniform(k1, (latent_dim, hidden_dim), jnp.float32, -lim1, lim1)
    b1 = jax.random.uniform(k2, (1, hidden_dim), jnp.float32, -lim1, lim1)
    lim2 = 1.0 / jnp.sqrt(hidden_dim)
    w2 = jax.random.uniform(k3, (hidden_dim, input_dim), jnp.float32, -lim2, lim2)
    b2 = jax.random.uniform(k4, (1, input_dim), jnp.float32, -lim2, lim2)
    return w1, b1, w2, b2


def decoder_reference_bf16(x, w1, b1, w2, b2):
    """Pure-JAX reference with the same bf16-input / f32-accumulate recipe."""
    h = jnp.dot(x.astype(jnp.bfloat16), w1.astype(jnp.bfloat16),
                preferred_element_type=jnp.float32) + b1
    h = jnp.maximum(h, 0.0)
    return jnp.dot(h.astype(jnp.bfloat16), w2.astype(jnp.bfloat16),
                   preferred_element_type=jnp.float32) + b2


if __name__ == "__main__":
    key = jax.random.PRNGKey(0)
    k_params, k_x1, k_x2 = jax.random.split(key, 3)

    latent_dim = 16
    input_dim = 64

    w1, b1, w2, b2 = init_decoder_params(k_params, input_dim, latent_dim)
    w1p, b1p, w2p, b2p = prepare_decoder_params(w1, b1, w2, b2)

    # Small-shape run (single grid step).
    x_small = jax.random.normal(k_x1, (8, latent_dim), dtype=jnp.float32)
    out_small = jax.block_until_ready(decoder_forward(x_small, w1p, b1p, w2p, b2p))
    assert out_small.shape == (8, input_dim)
    ref_small = decoder_reference_bf16(x_small, w1, b1, w2, b2)
    assert jnp.allclose(out_small, ref_small, atol=1e-2, rtol=1e-2)
    # Loose check against the pure-f32 module forward (bf16 MXU inputs, f32 accumulate).
    # TODO(synk): bit-parity with the f32 nn.Module would need f32 MXU / bf16x3 passes.
    ref_f32 = jnp.maximum(x_small @ w1 + b1, 0.0) @ w2 + b2
    assert jnp.allclose(out_small, ref_f32, atol=5e-2, rtol=5e-2)

    # Larger batch: exercises balanced batch tiling (grid=2) + masked partial last tile.
    x_big = jax.random.normal(k_x2, (300, latent_dim), dtype=jnp.float32)
    out_big = jax.block_until_ready(decoder_forward(x_big, w1p, b1p, w2p, b2p))
    assert out_big.shape == (300, input_dim)
    ref_big = decoder_reference_bf16(x_big, w1, b1, w2, b2)
    assert jnp.allclose(out_big, ref_big, atol=1e-2, rtol=1e-2)

    print("KERNEL_OK")
</pallas_src>

<mosaic_0001>
module attributes {stable_mosaic.version = 11 : i64} {
  func.func @decoder_kernel(%arg0: i32, %arg1: memref<8x16xf32, #tpu.memory_space<vmem>>, %arg2: memref<16x128xbf16, #tpu.memory_space<vmem>>, %arg3: memref<1x128xf32, #tpu.memory_space<vmem>>, %arg4: memref<128x64xbf16, #tpu.memory_space<vmem>>, %arg5: memref<1x64xf32, #tpu.memory_space<vmem>>, %arg6: memref<8x64xf32, #tpu.memory_space<vmem>>) attributes {dimension_semantics = [#tpu.dimension_semantics<parallel>], iteration_bounds = array<i64: 1>, scalar_prefetch = 0 : i64, scratch_operands = 0 : i64, tpu.core_type = #tpu.core_type<tc>, window_params = [{transform_indices = @transform_0, window_bounds = array<i64: 8, 16>}, {pipeline_mode = #tpu.pipeline_mode<synchronous>, transform_indices = @transform_1, window_bounds = array<i64: 16, 128>}, {pipeline_mode = #tpu.pipeline_mode<synchronous>, transform_indices = @transform_2, window_bounds = array<i64: 1, 128>}, {pipeline_mode = #tpu.pipeline_mode<synchronous>, transform_indices = @transform_3, window_bounds = array<i64: 128, 64>}, {pipeline_mode = #tpu.pipeline_mode<synchronous>, transform_indices = @transform_4, window_bounds = array<i64: 1, 64>}, {transform_indices = @transform_5, window_bounds = array<i64: 8, 64>}]} {
    %c0 = arith.constant 0 : index
    %c0_0 = arith.constant 0 : index
    %0 = vector.load %arg1[%c0, %c0_0] : memref<8x16xf32, #tpu.memory_space<vmem>>, vector<8x16xf32>
    %1 = arith.truncf %0 : vector<8x16xf32> to vector<8x16xbf16>
    %c0_1 = arith.constant 0 : index
    %c0_2 = arith.constant 0 : index
    %2 = vector.load %arg2[%c0_1, %c0_2] : memref<16x128xbf16, #tpu.memory_space<vmem>>, vector<16x128xbf16>
    %cst = arith.constant dense<0.000000e+00> : vector<8x128xf32>
    %3 = tpu.matmul %1, %2, %cst {dimension_numbers = #tpu.dot_dimension_numbers<[1], [0], [0], [1], [0, 0, 1, 1], [], []>} : vector<8x16xbf16>, vector<16x128xbf16>, vector<8x128xf32> -> vector<8x128xf32>
    %c0_3 = arith.constant 0 : index
    %c0_4 = arith.constant 0 : index
    %4 = vector.load %arg3[%c0_3, %c0_4] : memref<1x128xf32, #tpu.memory_space<vmem>>, vector<1x128xf32>
    %5 = vector.broadcast %4 : vector<1x128xf32> to vector<8x128xf32>
    %6 = arith.addf %3, %5 : vector<8x128xf32>
    %cst_5 = arith.constant 0.000000e+00 : f32
    %7 = vector.broadcast %cst_5 : f32 to vector<8x128xf32>
    %8 = arith.maximumf %6, %7 : vector<8x128xf32>
    %9 = arith.truncf %8 : vector<8x128xf32> to vector<8x128xbf16>
    %c0_6 = arith.constant 0 : index
    %c0_7 = arith.constant 0 : index
    %10 = vector.load %arg4[%c0_6, %c0_7] : memref<128x64xbf16, #tpu.memory_space<vmem>>, vector<128x64xbf16>
    %cst_8 = arith.constant dense<0.000000e+00> : vector<8x64xf32>
    %11 = tpu.matmul %9, %10, %cst_8 {dimension_numbers = #tpu.dot_dimension_numbers<[1], [0], [0], [1], [0, 0, 1, 1], [], []>} : vector<8x128xbf16>, vector<128x64xbf16>, vector<8x64xf32> -> vector<8x64xf32>
    %c0_9 = arith.constant 0 : index
    %c0_10 = arith.constant 0 : index
    %12 = vector.load %arg5[%c0_9, %c0_10] : memref<1x64xf32, #tpu.memory_space<vmem>>, vector<1x64xf32>
    %13 = vector.broadcast %12 : vector<1x64xf32> to vector<8x64xf32>
    %14 = arith.addf %11, %13 : vector<8x64xf32>
    %c0_11 = arith.constant 0 : index
    %c0_12 = arith.constant 0 : index
    %15 = vector.load %arg6[%c0_11, %c0_12] : memref<8x64xf32, #tpu.memory_space<vmem>>, vector<8x64xf32>
    tpu.vector_store %arg6[%c0_11, %c0_12], %14 {strides = array<i32>} : memref<8x64xf32, #tpu.memory_space<vmem>>, vector<8x64xf32>,
    return
  }
  func.func @transform_0(%arg0: i32) -> (i32, i32) {
    %c0_i32 = arith.constant 0 : i32
    %c0_i32_0 = arith.constant 0 : i32
    return %arg0, %c0_i32 : i32, i32
  }
  func.func @transform_1(%arg0: i32) -> (i32, i32) {
    %c0_i32 = arith.constant 0 : i32
    %c0_i32_0 = arith.constant 0 : i32
    %c0_i32_1 = arith.constant 0 : i32
    return %c0_i32, %c0_i32_0 : i32, i32
  }
  func.func @transform_2(%arg0: i32) -> (i32, i32) {
    %c0_i32 = arith.constant 0 : i32
    %c0_i32_0 = arith.constant 0 : i32
    %c0_i32_1 = arith.constant 0 : i32
    return %c0_i32, %c0_i32_0 : i32, i32
  }
  func.func @transform_3(%arg0: i32) -> (i32, i32) {
    %c0_i32 = arith.constant 0 : i32
    %c0_i32_0 = arith.constant 0 : i32
    %c0_i32_1 = arith.constant 0 : i32
    return %c0_i32, %c0_i32_0 : i32, i32
  }
  func.func @transform_4(%arg0: i32) -> (i32, i32) {
    %c0_i32 = arith.constant 0 : i32
    %c0_i32_0 = arith.constant 0 : i32
    %c0_i32_1 = arith.constant 0 : i32
    return %c0_i32, %c0_i32_0 : i32, i32
  }
  func.func @transform_5(%arg0: i32) -> (i32, i32) {
    %c0_i32 = arith.constant 0 : i32
    %c0_i32_0 = arith.constant 0 : i32
    return %arg0, %c0_i32 : i32, i32
  }
}

</mosaic_0001>

<bundles_post_ra>
// kernel: tpu_custom_call.1
= control target key start
LH: loop header
LB: loop body
LE: loop exit
PB: predicated region body
PF: predicated region fallthrough
CT: control target
= control target key end

     0   :  { %vm36_vm0 = vcmask 130048   ;;  %s299_s0 = inlined_call_operand.vmem [shape: f32[8,16], index: 0, kind: input, shape index: {}]   ;;  %s300_s1 = inlined_call_operand.vmem [shape: bf16[16,128], index: 1, kind: input, shape index: {}]   ;;  %s301_s2 = inlined_call_operand.vmem [shape: f32[1,128], index: 2, kind: input, shape index: {}]   ;;  %s302_s3 = inlined_call_operand.vmem [shape: bf16[128,64], index: 3, kind: input, shape index: {}]   ;;  %s303_s4 = inlined_call_operand.vmem [shape: f32[1,64], index: 4, kind: input, shape index: {}]   ;;  %s304_s5 = inlined_call_operand.hbm [shape: f32[8,64], index: 5, kind: output, shape index: {}]  }
   0x1   :  { %v191_v0 = vld [vmem:[%s300_s1] sm:$0xff]  ;;  %v199_v2 = vld [vmem:[%s302_s3 + $0x38] sm:$0xff]  ;;  %v198_v4 = vld [vmem:[%s302_s3 + $0x30] sm:$0xff] }
   0x2   :  { %v22_v1 = vld [vmem:[%s299_s0] sm:$0xff]  ;;  %47 = vmatpush.bf16.msra.mxu0 %v191_v0  ;;  %123 = vmatpush.bf16.msra.mxu1 %v199_v2 }
   0x3   :  { %v23_v3 = vpack.c.bf16 %v22_v1, %v22_v1 }
   0x4   :  { %10 = vsyncpa [#allocation3], 0  ;;  %v197_v5 = vld [vmem:[%s302_s3 + $0x28] sm:$0xff]  ;;  %v196_v6 = vld [vmem:[%s302_s3 + $0x20] sm:$0xff]  ;;  %s229_s15 = smov [#allocation2]   ;;  %vm136_vm1 = vcmask 523264  }
   0x5   :  { %158 = vmatmul.msk.bf16.vlgmr.msra.gmra.mxu0 %vm36_vm0, %v23_v3  ;;  %v195_v7 = vld [vmem:[%s302_s3 + $0x18] sm:$0xff]  ;;  %v194_v8 = vld [vmem:[%s302_s3 + $0x10] sm:$0xff]  ;;  %v193_v9 = vld [vmem:[%s302_s3 + $0x8] sm:$0xff]  ;;  %s143_s16 = sshll.u32 %s229_s15, 4  ;;  %s144_s16 = int_to_ptr.vmem [resolvable:$true] %s143_s16 }
   0x6   :  { %124 = vmatpush.bf16.msra.mxu1 %v198_v4  ;;  %v192_v10 = vld [vmem:[%s302_s3] sm:$0xff]  ;;  %s145_s3 = sshll.u32 %s304_s5, 4  ;;  %s146_s3 = int_to_ptr.hbm [resolvable:$true] %s145_s3 }
   0x7   :  { %v201_v11 = vld [vmem:[%s301_s2] ss:$0 sm:$0xff] }
   0x8   :  { %v202_v17 = vld [vmem:[%s303_s4] ss:$0 sm:$0xff] }
   0xa   :  { %125 = vmatpush.bf16.msra.mxu1 %v197_v5 }
   0xe   :  { %126 = vmatpush.bf16.msra.mxu1 %v196_v6 }
  0x12   :  { %127 = vmatpush.bf16.msra.mxu1 %v195_v7 }
  0x16   :  { %128 = vmatpush.bf16.msra.mxu1 %v194_v8 }
  0x1a   :  { %129 = vmatpush.bf16.msra.mxu1 %v193_v9 }
  0x1e   :  { %130 = vmatpush.bf16.msra.mxu1 %v192_v10 }
  0x82   :  { %v49_v12 = vpop.f32.mrf.mxu0 }
  0x83   :  { %v50_v13 = vadd.f32 %v201_v11, %v49_v12 }
  0x85   :  { %v53_v14 = vmax.f32 %v50_v13, 0.0 }
  0x87   :  { %v54_v15 = vpack.c.bf16 %v53_v14, %v53_v14 }
  0x89   :  { %131 = vmatmul.bf16.vlgmr.msra.gmra.mxu1 %v54_v15 }
  0x8a   :  { %v51_v16 = vpop.f32.mrf.mxu0 }
 0x106   :  { %v132_v18 = vpop.f32.mrf.mxu1 }
 0x107   :  { %v133_v19 = vadd.f32 %v202_v17, %v132_v18 }
 0x109   :  { %137 = vst.msk [vmem:[#allocation2] sm:$0xff] %vm136_vm1, %v133_v19 }
 0x10a   :  { %148 = dma.vmem_to_hbm [thread:$0]  %s144_s16, 128, %s146_s3, [#allocation3]  }
 0x10e   :  { %v134_v20 = vpop.f32.mrf.mxu1 }
 0x10f   :  { %227 = dma.done.wait [#allocation3], 128  }
 0x110   :  { %228 = vsyncadd [#allocation3], 4294967168 }
 0x111   :  { %153 = vsyncpa [#allocation3], 1 }

</bundles_post_ra>
